<compile_context>
chip_gen: v7x
topology: tpu7x:2x2x1
jax: 0.10.0
libtpu: 0.0.40
codegen_flags: <defaults>
</compile_context>

<pallas_src>
import functools

import jax
import jax.numpy as jnp
from jax.experimental import pallas as pl
from jax.experimental.pallas import tpu as pltpu


def _round_up(v, m):
    return ((v + m - 1) // m) * m


# ---------------------------------------------------------------------------
# Path A: small K — pooled features VMEM-resident (fetched once, single
# buffer); one-hot MXU contraction over all K_pad pooled rows per output tile.
# ---------------------------------------------------------------------------
def _unpool_resident_kernel(inv_ref, x_ref, out_ref):
    # inv_ref : (T, 1)  int32  — source row in x for each output row, or -1.
    # x_ref   : (K_pad, F_pad) — pooled features, grid-invariant block.
    # out_ref : (T, F_pad)     — lane/sublane-dense output tile.
    inv = inv_ref[...]                                          # (T, 1)
    t = out_ref.shape[0]
    k_pad = x_ref.shape[0]
    col = jax.lax.broadcasted_iota(jnp.int32, (t, k_pad), 1)    # (T, K_pad)
    onehot = (col == inv).astype(x_ref.dtype)                   # inv==-1 -> zero row
    out_ref[...] = jnp.dot(
        onehot, x_ref[...], preferred_element_type=jnp.float32
    ).astype(out_ref.dtype)


def _scatter_rows_resident(x, global_idx, n_out, tile_rows):
    k, f = x.shape
    itemsize = jnp.dtype(x.dtype).itemsize
    f_pad = _round_up(max(f, 1), 128)                 # lane-dense output
    sub = 8 * max(1, 4 // itemsize)                   # sublane multiple per dtype
    k_pad = _round_up(max(k, 1), sub)

    # ---- tile_rows selection -------------------------------------------
    if tile_rows is None:
        tile_rows = 1024                              # amortize per-step overhead
    tile_rows = max(8, _round_up(tile_rows, 8))
    # keep >= 2 grid steps where possible so both v7x TensorCores get work
    two_step_cap = _round_up(max(-(-max(n_out, 1) // 2), 8), 8)
    tile_rows = min(tile_rows, two_step_cap)
    # VMEM budget: 2x out tile + 2x lane-padded inv tile + 1x resident x
    budget = 20 * 2**20
    resident_bytes = k_pad * f_pad * itemsize
    per_row = 2 * f_pad * itemsize + 2 * 128 * 4      # inv (T,1) lane-pads to (T,128)
    t_cap = max(8, ((budget - resident_bytes) // per_row) // 8 * 8)
    tile_rows = max(8, min(tile_rows, t_cap))
    n_pad = _round_up(max(n_out, 1), tile_rows)

    # pooled features, zero-padded (zero rows/cols are harmless in the matmul)
    x_p = jnp.zeros((k_pad, f_pad), x.dtype).at[:k, :f].set(x)
    # inverse map: output row -> pooled row (-1 = none).
    # NOTE: duplicate global_idx entries pick an unspecified winner here, while
    # torch `new_x[idx] = x` is last-write-wins; pooling indices are unique per
    # graph so this never triggers for valid inputs.
    inv = (jnp.full((n_pad,), -1, dtype=jnp.int32)
           .at[global_idx.astype(jnp.int32)]
           .set(jnp.arange(k, dtype=jnp.int32)))
    inv2 = inv.reshape(n_pad, 1)

    est_vmem = resident_bytes + tile_rows * per_row
    vmem_limit = int(min(48 * 2**20, max(32 * 2**20, 2 * est_vmem)))

    out = pl.pallas_call(
        _unpool_resident_kernel,
        out_shape=jax.ShapeDtypeStruct((n_pad, f_pad), x.dtype),
        grid=(n_pad // tile_rows,),
        in_specs=[
            pl.BlockSpec((tile_rows, 1), lambda i: (i, 0)),
            # grid-invariant block: fetch once, single buffer (halves its VMEM)
            pl.BlockSpec((k_pad, f_pad), lambda i: (0, 0),
                         pipeline_mode=pl.Buffered(1)),
        ],
        out_specs=pl.BlockSpec((tile_rows, f_pad), lambda i: (i, 0)),
        compiler_params=pltpu.CompilerParams(
            dimension_semantics=("parallel",),
            vmem_limit_bytes=vmem_limit),
        cost_estimate=pl.CostEstimate(
            flops=2 * n_pad * k_pad * f_pad,
            transcendentals=0,
            bytes_accessed=(n_pad + k_pad) * f_pad * itemsize + n_pad * 4),
    )(inv2, x_p)

    if n_pad == n_out and f_pad == f:      # avoid an extra HBM pass when unpadded
        return out
    return out[:n_out, :f]


# ---------------------------------------------------------------------------
# Path B: large K — sorted, bounded-window contraction (FLOPs independent of K)
# ---------------------------------------------------------------------------
def _unpool_window_kernel(lo_blk_ref, sg_lo_ref, sg_hi_ref,
                          xs_lo_ref, xs_hi_ref, out_ref):
    # lo_blk_ref : SMEM prefetch scalars — consumed by the index_maps only.
    # sg_*_ref   : (1, T) int32 — destination row of each windowed source row
    #              (sentinel n_pad for padding -> never matches).
    # xs_*_ref   : (T, F_pad)   — windowed, destination-sorted source features.
    # out_ref    : (T, F_pad)   — output tile for rows [i*T, (i+1)*T).
    del lo_blk_ref
    t = out_ref.shape[0]
    win = sg_lo_ref.shape[1]
    base = pl.program_id(0) * t
    row = jax.lax.broadcasted_iota(jnp.int32, (t, win), 0) + base   # output row ids
    oh_lo = (row == sg_lo_ref[...]).astype(xs_lo_ref.dtype)         # (T, T)
    oh_hi = (row == sg_hi_ref[...]).astype(xs_hi_ref.dtype)
    acc = jnp.dot(oh_lo, xs_lo_ref[...], preferred_element_type=jnp.float32)
    acc = acc + jnp.dot(oh_hi, xs_hi_ref[...], preferred_element_type=jnp.float32)
    out_ref[...] = acc.astype(out_ref.dtype)


def _scatter_rows_sorted(x, global_idx, n_out, tile_rows):
    k, f = x.shape
    itemsize = jnp.dtype(x.dtype).itemsize
    f_pad = _round_up(max(f, 1), 128)

    if tile_rows is None:
        tile_rows = 256                    # contraction = 2*T: keep near roofline
    t = max(128, _round_up(tile_rows, 128))
    two_step_cap = max(128, _round_up(-(-max(n_out, 1) // 2), 128))
    t = min(t, two_step_cap)

    n_pad = _round_up(max(n_out, 1), t)
    num_tiles = n_pad // t
    num_src_blocks = k // t + 2            # window [lo_blk, lo_blk+1] always in-bounds
    k_pad2 = num_src_blocks * t
    sentinel = jnp.int32(n_pad)            # never equals any (padded) output row id

    # Sort sources by destination row; per-tile sources are then a contiguous,
    # <= T-long run that fits inside a 2*T window aligned to T.
    # NOTE: duplicate destinations would be summed here (torch: last-write-wins);
    # pooling indices are unique per graph so this never triggers for valid inputs.
    order = jnp.argsort(global_idx)
    sg = global_idx.astype(jnp.int32)[order]
    xs = x[order]
    sg_p = jnp.full((1, k_pad2), sentinel, jnp.int32).at[0, :k].set(sg)
    xs_p = jnp.zeros((k_pad2, f_pad), x.dtype).at[:k, :f].set(xs)

    tile_starts = jnp.arange(num_tiles, dtype=jnp.int32) * t
    lo = jnp.searchsorted(sg, tile_starts).astype(jnp.int32)
    lo_blk = lo // t                        # per-tile window start block index

    grid_spec = pltpu.PrefetchScalarGridSpec(
        num_scalar_prefetch=1,
        grid=(num_tiles,),
        in_specs=[
            pl.BlockSpec((1, t), lambda i, lo_blk: (0, lo_blk[i])),
            pl.BlockSpec((1, t), lambda i, lo_blk: (0, lo_blk[i] + 1)),
            pl.BlockSpec((t, f_pad), lambda i, lo_blk: (lo_blk[i], 0)),
            pl.BlockSpec((t, f_pad), lambda i, lo_blk: (lo_blk[i] + 1, 0)),
        ],
        out_specs=pl.BlockSpec((t, f_pad), lambda i, lo_blk: (i, 0)),
    )

    est_vmem = (2 * t * f_pad * itemsize          # out tiles (double-buffered)
                + 4 * t * f_pad * itemsize        # two xs windows, double-buffered
                + 4 * 8 * t * 4)                  # two sg windows (sublane-padded)
    vmem_limit = int(min(48 * 2**20, max(32 * 2**20, 2 * est_vmem)))

    out = pl.pallas_call(
        _unpool_window_kernel,
        out_shape=jax.ShapeDtypeStruct((n_pad, f_pad), x.dtype),
        grid_spec=grid_spec,
        compiler_params=pltpu.CompilerParams(
            dimension_semantics=("parallel",),
            vmem_limit_bytes=vmem_limit),
        cost_estimate=pl.CostEstimate(
            flops=4 * n_pad * t * f_pad,
            transcendentals=0,
            bytes_accessed=(n_pad + 2 * k_pad2) * f_pad * itemsize
                           + k_pad2 * 4 + num_tiles * 4),
    )(lo_blk, sg_p, sg_p, xs_p, xs_p)

    if n_pad == n_out and f_pad == f:
        return out
    return out[:n_out, :f]


def scatter_rows(x, global_idx, n_out, *, tile_rows=None, resident_k_limit=512):
    """new_x = zeros((n_out, F)); new_x[global_idx] = x — as a tiled output gather."""
    k, f = x.shape
    if k == 0 or n_out == 0:
        return jnp.zeros((n_out, f), x.dtype)
    itemsize = jnp.dtype(x.dtype).itemsize
    resident_bytes = _round_up(max(k, 1), 8) * _round_up(max(f, 1), 128) * itemsize
    if k <= resident_k_limit and resident_bytes <= 4 * 2**20:
        return _scatter_rows_resident(x, global_idx, n_out, tile_rows)
    return _scatter_rows_sorted(x, global_idx, n_out, tile_rows)


def unpool(x, edge_index, batch, idx, orig_num_nodes, *,
           tile_rows=None, resident_k_limit=512):
    """JAX/Pallas port of Unpool.forward (PyG Data fields passed explicitly)."""
    if batch is None:
        batch = jnp.zeros((x.shape[0],), dtype=jnp.int32)
    batch = batch.astype(jnp.int32)
    idx = idx.astype(jnp.int32)
    orig_num_nodes = jnp.atleast_1d(jnp.asarray(orig_num_nodes, dtype=jnp.int32))

    # max_nodes is computed but unused in the reference forward; omitted.

    # Tiny integer glue in plain JAX: per-graph offsets and global scatter idx.
    # Torch sizes batch_offsets as batch.max()+1, which for any valid call
    # equals len(orig_num_nodes); the `if batch.max() > 0` guard becomes where.
    num_graphs = orig_num_nodes.shape[0]
    offsets_tail = jnp.cumsum(orig_num_nodes)[:-1]
    offsets_full = jnp.concatenate(
        [jnp.zeros((1,), jnp.int32), offsets_tail.astype(jnp.int32)])
    batch_offsets = jnp.where(jnp.max(batch) > 0, offsets_full,
                              jnp.zeros((num_graphs,), jnp.int32))
    global_idx = idx + batch_offsets[batch[idx]]

    n_out = batch.shape[0]
    new_x = scatter_rows(x, global_idx, n_out,
                         tile_rows=tile_rows, resident_k_limit=resident_k_limit)
    return new_x, edge_index, batch
    # TODO(synk): edge_index / batch are pure pass-through (no compute), kept in JAX.


def _reference_unpool(x, batch, idx, orig_num_nodes):
    onn = jnp.atleast_1d(jnp.asarray(orig_num_nodes, jnp.int32))
    offsets = jnp.where(
        jnp.max(batch) > 0,
        jnp.concatenate([jnp.zeros((1,), jnp.int32),
                         jnp.cumsum(onn)[:-1].astype(jnp.int32)]),
        jnp.zeros((onn.shape[0],), jnp.int32))
    gidx = idx + offsets[batch[idx]]
    return jnp.zeros((batch.shape[0], x.shape[1]), x.dtype).at[gidx].set(x)


if __name__ == "__main__":
    key = jax.random.PRNGKey(0)

    # ---- Test 1: batched graph (2 graphs), lane-aligned F, resident path ----
    F = 128
    K = 8
    orig_num_nodes = jnp.array([8, 24], dtype=jnp.int32)
    batch = jnp.concatenate([jnp.zeros(8, jnp.int32), jnp.ones(24, jnp.int32)])
    idx = jnp.array([1, 3, 5, 7, 9, 12, 15, 20], dtype=jnp.int32)
    x = jax.random.normal(key, (K, F), dtype=jnp.float32)
    edge_index = jnp.array([[0, 1, 2, 3], [1, 2, 3, 0]], dtype=jnp.int32)

    unpool_jit = jax.jit(unpool)
    new_x, ei_out, batch_out = unpool_jit(x, edge_index, batch, idx, orig_num_nodes)
    new_x = jax.block_until_ready(new_x)
    ref = _reference_unpool(x, batch, idx, orig_num_nodes)
    assert new_x.shape == (batch.shape[0], F) and new_x.dtype == x.dtype
    assert jnp.allclose(new_x, ref), "Pallas unpool (batched) mismatch"
    assert jnp.array_equal(ei_out, edge_index)
    assert jnp.array_equal(batch_out, batch)

    # ---- Test 2: single graph, non-128-aligned F, resident path ------------
    F2, K2, N2 = 64, 5, 20
    x2 = jax.random.normal(jax.random.PRNGKey(1), (K2, F2), dtype=jnp.float32)
    idx2 = jnp.array([0, 3, 7, 11, 19], dtype=jnp.int32)
    onn2 = jnp.array([N2], dtype=jnp.int32)
    batch2 = jnp.zeros((N2,), dtype=jnp.int32)
    new_x2, _, _ = jax.jit(unpool)(x2, edge_index, batch2, idx2, onn2)
    new_x2 = jax.block_until_ready(new_x2)
    ref2 = _reference_unpool(x2, batch2, idx2, onn2)
    assert jnp.allclose(new_x2, ref2), "Pallas unpool (single graph) mismatch"

    # ---- Test 3: force the sorted bounded-window (large-K) path ------------
    F3, K3, N3 = 128, 300, 640
    x3 = jax.random.normal(jax.random.PRNGKey(2), (K3, F3), dtype=jnp.float32)
    idx3 = jax.random.permutation(jax.random.PRNGKey(3), N3)[:K3].astype(jnp.int32)
    onn3 = jnp.array([N3], dtype=jnp.int32)
    batch3 = jnp.zeros((N3,), dtype=jnp.int32)
    unpool_sorted = jax.jit(functools.partial(unpool, resident_k_limit=0))
    new_x3, _, _ = unpool_sorted(x3, edge_index, batch3, idx3, onn3)
    new_x3 = jax.block_until_ready(new_x3)
    ref3 = _reference_unpool(x3, batch3, idx3, onn3)
    assert jnp.allclose(new_x3, ref3), "Pallas unpool (sorted-window path) mismatch"

    print("KERNEL_OK")
</pallas_src>

<mosaic_0001>
module attributes {stable_mosaic.version = 11 : i64} {
  func.func @_unpool_resident_kernel(%arg0: i32, %arg1: memref<16x1xi32, #tpu.memory_space<vmem>>, %arg2: memref<8x128xf32, #tpu.memory_space<vmem>>, %arg3: memref<16x128xf32, #tpu.memory_space<vmem>>) attributes {dimension_semantics = [#tpu.dimension_semantics<parallel>], iteration_bounds = array<i64: 2>, scalar_prefetch = 0 : i64, scratch_operands = 0 : i64, tpu.core_type = #tpu.core_type<tc>, window_params = [{transform_indices = @transform_0, window_bounds = array<i64: 16, 1>}, {pipeline_mode = #tpu.pipeline_mode<synchronous>, transform_indices = @transform_1, window_bounds = array<i64: 8, 128>}, {transform_indices = @transform_2, window_bounds = array<i64: 16, 128>}]} {
    %c0 = arith.constant 0 : index
    %c0_0 = arith.constant 0 : index
    %0 = vector.load %arg1[%c0, %c0_0] : memref<16x1xi32, #tpu.memory_space<vmem>>, vector<16x1xi32>
    %1 = tpu.iota {dimensions = array<i32: 1>} : vector<16x8xi32>
    %2 = vector.broadcast %0 : vector<16x1xi32> to vector<16x8xi32>
    %3 = arith.cmpi eq, %1, %2 : vector<16x8xi32>
    %4 = arith.extui %3 : vector<16x8xi1> to vector<16x8xi32>
    %5 = arith.sitofp %4 : vector<16x8xi32> to vector<16x8xf32>
    %c0_1 = arith.constant 0 : index
    %c0_2 = arith.constant 0 : index
    %6 = vector.load %arg2[%c0_1, %c0_2] : memref<8x128xf32, #tpu.memory_space<vmem>>, vector<8x128xf32>
    %cst = arith.constant dense<0.000000e+00> : vector<16x128xf32>
    %7 = tpu.matmul %5, %6, %cst {dimension_numbers = #tpu.dot_dimension_numbers<[1], [0], [0], [1], [0, 0, 1, 1], [], []>} : vector<16x8xf32>, vector<8x128xf32>, vector<16x128xf32> -> vector<16x128xf32>
    %c0_3 = arith.constant 0 : index
    %c0_4 = arith.constant 0 : index
    %8 = vector.load %arg3[%c0_3, %c0_4] : memref<16x128xf32, #tpu.memory_space<vmem>>, vector<16x128xf32>
    tpu.vector_store %arg3[%c0_3, %c0_4], %7 {strides = array<i32>} : memref<16x128xf32, #tpu.memory_space<vmem>>, vector<16x128xf32>,
    return
  }
  func.func @transform_0(%arg0: i32) -> (i32, i32) {
    %c0_i32 = arith.constant 0 : i32
    %c0_i32_0 = arith.constant 0 : i32
    return %arg0, %c0_i32 : i32, i32
  }
  func.func @transform_1(%arg0: i32) -> (i32, i32) {
    %c0_i32 = arith.constant 0 : i32
    %c0_i32_0 = arith.constant 0 : i32
    %c0_i32_1 = arith.constant 0 : i32
    return %c0_i32, %c0_i32_0 : i32, i32
  }
  func.func @transform_2(%arg0: i32) -> (i32, i32) {
    %c0_i32 = arith.constant 0 : i32
    %c0_i32_0 = arith.constant 0 : i32
    return %arg0, %c0_i32 : i32, i32
  }
}

</mosaic_0001>

<bundles_post_ra>
// kernel: unpool.1
= control target key start
LH: loop header
LB: loop body
LE: loop exit
PB: predicated region body
PF: predicated region fallthrough
CT: control target
= control target key end

     0   :  { %7 = vsyncpa [#allocation3], 0  ;;  %s580_s0 = inlined_call_operand.vmem [shape: s32[32,1], index: 0, kind: input, shape index: {}]   ;;  %s581_s1 = inlined_call_operand.vmem [shape: f32[8,128], index: 1, kind: input, shape index: {}]   ;;  %s582_s2 = inlined_call_operand.hbm [shape: f32[32,128], index: 2, kind: output, shape index: {}]  }
   0x1   :  { %9 = vsyncpa [#allocation3 + $0x1], 0  ;;  %s475_s9 = smov 0   ;;  %s477_s10 = smov 0  }
   0x2   :  { %s479_s11 = smov 0   ;;  %s481_s12 = smov 0  }
   0x3 LB: > { %s496_s13 = sadd.s32 4294967295, %s453_s12   ;;  %s322_s14 = sadd.s32 4294967294, %s453_s12   ;;  %s453_s12 = sphi %s481_s12, %s588_s12   ;;  %s449_s11 = sphi %s479_s11, %s587_s11   ;;  %s445_s10 = sphi %s477_s10, %s586_s10   ;;  %s441_s9 = sphi %s475_s9, %s585_s9  }
   0x4   : > { %s500_s15 = sadd.s32 1, %s453_s12   ;;  %s69_s16 = sadd.s32 1, %s449_s11 }
   0x5   : > { %s66_s17 = ssub.s32 %s453_s12, %s500_s15  ;;  %p79_p0 = scmp.ne.s32.totalorder %s449_s11, %s445_s10 }
   0x6   : > { %p67_p1 = scmp.eq.s32.totalorder %s66_s17, 0  ;;  %p80_p2 = scmp.eq.s32.totalorder %s496_s13, 1 }
   0x7   : > { %p85_p3 = scmp.ne.s32.totalorder %s445_s10, %s441_s9  ;;  %p86_p4 = scmp.eq.s32.totalorder %s322_s14, 1 }
   0x8   : > { %s511_s18 = scalar_select %p67_p1, %s449_s11, %s69_s16  }
   0x9   : > { %p513_p5 = por %p80_p2, %p79_p0  ;;  %p517_p6 = por %p86_p4, %p85_p3 }
   0xa   : > { %p325_p7 = scmp.ge.s32.totalorder %s453_s12, 1  ;;  %p116_p8 = scmp.lt.s32.totalorder %s453_s12, 3 }
   0xc   : > { %p117_p9 = pnand %p325_p7, %p116_p8 }
   0xd   : > { %s327_s21 = sshll.u32 (!%p117_p9), %s496_s13, 1  ;;  %v455_v0 = vmov (!%p117_p9), 0   ;;  %v161_v3 = vld [vmem:[%s581_s1] sm:$0xff] (!%p117_p9)  ;;  %v147_v4 = vlaneseq (!%p117_p9)  ;;  %vm162_vm0 = vcmask (!%p117_p9), 64512   ;;  %v456_v7 = vmov (!%p117_p9), 0.0   ;;  %s135_s28 = sand.u32 (!%p117_p9), 1, %s445_s10  }
   0xe   : > { %120 = sbr.rel (%p117_p9) target bundleno = 387 (0x183), region = 28  ;;  %390 = vset.pattern.permute.xlu0 (!%p117_p9), %v455_v0  ;;  %p139_p10 = scmp.lt.s32.totalorder (!%p117_p9), %s327_s21, 3  ;;  %342 = vmatprep.subr.mxu0 (!%p117_p9), %v161_v3 }
   0xf   : > { %343 = vmatpush3.msra.mxu0 (!%p117_p9), %v161_v3  ;;  %v148_v5 = vand.u32 (!%p117_p9), 127, %v147_v4  ;;  %s326_s29 = sshll.u32 (!%p117_p9), %s135_s28, 4  ;;  %s338_s4 = sshll.u32 (!%p117_p9), %s496_s13, 8 }
  0x10   : > { %s137_s30 = scalar_lea.vmem (!%p117_p9), [#allocation2], %s326_s29  ;;  %s537_s7 = scalar_lea.hbm (!%p117_p9), %s582_s2, %s338_s4 }
  0x11   : > { %s260_s3 = sshll.u32 (!%p117_p9), %s137_s30, 4  ;;  %s539_s8 = scalar_lea.sflag (!%p117_p9), [#allocation3], %s135_s28  ;;  %s532_s3 = int_to_ptr.vmem [resolvable:$true] %s260_s3 }
  0x12   : > { %s391_s14 = scalar_lea.vmem (!%p117_p9), %s532_s3, 256  ;;  %s457_s13 = smov (!%p117_p9), [#allocation2]  }
  0x13   : > { %p392_p11 = scmp.ne.s32.totalorder (!%p117_p9), %s532_s3, %s391_s14  ;;  %s395_s16 = sshll.u32 (!%p117_p9), %s457_s13, 4  ;;  %s396_s16 = int_to_ptr.vmem [resolvable:$false] %s395_s16 }
  0x14   : > { %s397_s17 = scalar_lea.vmem (!%p117_p9), %s396_s16, 512  ;;  %p398_p0 = scmp.lt.s32.totalorder (!%p117_p9), %s532_s3, %s396_s16 }
  0x15   : > { %s590_s21 = smov (!%p139_p10, %s327_s21), 3  ;;  %p393_p12 = pnand %p392_p11, %p513_p5 }
  0x16   : > { %s328_s22 = sshll.u32 %s590_s21, 3  ;;  %p399_p1 = scmp.lt.s32.totalorder %s397_s17, %s391_s14 }
  0x17   : > { %s142_s25 = scalar_lea.vmem %s580_s0, %s328_s22  ;;  %p394_p13 = pneg %p393_p12 }
  0x18   : > { %v145_v1 = vld [vmem:[%s142_s25] sm:$0xff]  ;;  %v146_v2 = vld [vmem:[%s142_s25 + $0x8] sm:$0xff]  ;;  %p400_p2 = por %p399_p1, %p398_p0 }
  0x19   : > { %150 = vperm.xlu0 %390, %v145_v1  }
  0x1a   : > { %p401_p3 = pnand %p400_p2, %p394_p13 }
  0x1d   : > { %153 = vperm.xlu0 %390, %v146_v2  }
  0x98   : > { %v151_v6 = vpop.permute.xlu0 %150 }
  0x99   : > { %vm155_vm1 = vcmp.eq.s32.totalorder %v148_v5, %v151_v6 }
  0x9a   : > { %v329_v8 = vsel %vm155_vm1, 1.0, %v456_v7 }
  0x9b   : > { %344 = vmatprep.mubr.msk.f32.mxu0 %vm162_vm0, %v329_v8 }
  0x9c   : > { %v154_v9 = vpop.permute.xlu0 %153 }
  0x9d   : > { %vm156_vm2 = vcmp.eq.s32.totalorder %v148_v5, %v154_v9 }
  0x9e   : > { %v330_v10 = vsel %vm156_vm2, 1.0, %v456_v7 }
  0x9f   : > { %345 = vmatmul.mubr.msk.f32.vlgmr.msra.gmra.mrb[0].mxu0 %vm162_vm0, %v330_v10 }
 0x172   : > { %v346_v11 = vpop.f32.mrb[0].mxu0 }
 0x173   : > { %245 = vst [vmem:[%s137_s30 + $0x8] sm:$0xff] %v346_v11  ;;  %v235_v12 = vpop.f32.mrb[1].mxu0 }
 0x174   : > { %244 = vst [vmem:[%s137_s30] sm:$0xff] %v235_v12 }
 0x175   : > { %404 = shalt.err (!%p401_p3)
}
 0x176   : > { %s405_s21 = scalar_lea.hbm %s537_s7, 256  ;;  %s409_s24 = scalar_lea.hbm %s582_s2, 512 }
 0x177   : > { %p406_p4 = scmp.ne.s32.totalorder %s537_s7, %s405_s21  ;;  %p410_p9 = scmp.lt.u32.totalorder %s537_s7, %s582_s2 }
 0x178   : > { %p411_p10 = scmp.lt.u32.totalorder %s409_s24, %s405_s21  ;;  %p413_p12 = scmp.lt.u32.totalorder %s405_s21, %s537_s7 }
 0x179   : > { %p407_p7 = pnand %p406_p4, %p513_p5 }
 0x17a   : > { %p412_p11 = por %p411_p10, %p410_p9 }
 0x17b   : > { %p408_p8 = pneg %p407_p7 }
 0x17c   : > { %p414_p13 = por %p413_p12, %p412_p11 }
 0x17e   : > { %p415_p0 = pnand %p414_p13, %p408_p8 }
 0x180   : > { %418 = shalt.err (!%p415_p0)
}
 0x181   : > { %s458_s27 = smov 128   ;;  %s459_s28 = smov 8  }
 0x182   : > { %347 = dma.vmem_to_hbm [thread:$0]  (%p513_p5), %s532_s3, 256, %s537_s7, %s539_s8, %s458_s27, %s458_s27, %s459_s28  }
 0x183 PF: > { %p353_p1 = scmp.ge.s32.totalorder %s453_s12, 2  ;;  %s275_s29 = sand.u32 1, %s441_s9  }
 0x184   : > { %s276_s30 = scalar_lea.sflag [#allocation3], %s275_s29 }
 0x185   : > { %p350_p2 = pnand %p353_p1, %p517_p6 }
 0x187   : > { %436 = dma.done.wait (!%p350_p2), %s276_s30, 256  }
 0x188   : > { %438 = vsyncadd (!%p350_p2), %s276_s30, 4294967040  ;;  %p12_p3 = scmp.ge.s32.totalorder %s500_s15, 4   ;;  %s585_s9 = smov %s445_s10 }
 0x189   : > { %s586_s10 = smov %s449_s11  ;;  %s587_s11 = smov %s511_s18 }
 0x18a   : > { %s588_s12 = smov %s500_s15  ;;  %14 = sbr.rel (!%p12_p3) target bundleno = 3 (0x3), region = 63 }
 0x191   :  { %281 = vsyncpa [#allocation3], 1 }
 0x192   :  { %283 = vsyncpa [#allocation3 + $0x1], 1 }

</bundles_post_ra>
